<compile_context>
chip_gen: v7x
topology: tpu7x:2x2x1
jax: 0.10.0
libtpu: 0.0.40
codegen_flags: <defaults>
</compile_context>

<pallas_src>
import functools

import jax
import jax.numpy as jnp
from jax.experimental import pallas as pl
from jax.experimental.pallas import tpu as pltpu


def _round_up(x, m):
    return (x + m - 1) // m * m


def _pick_channel_tile(c_out):
    """Big tiles fill the MXU's 128/256 rows; >=2 tiles lets v7x's 2 TCs split the grid."""
    c8 = _round_up(c_out, 8)
    for tc in (256, 128):
        if c8 > tc:            # tile of `tc` rows still leaves at least 2 grid steps
            return tc
    return min(c8, 256)        # small C_out: one full tile (grid of 1)


def _tcn_kernel(a_ref, w_ref, gb_ref, o_ref, conv_ref, *, n_valid, eps, n_chunk):
    """Fused im2col-conv matmul + single-pass BatchNorm (batch stats) + ReLU.

    a_ref:    (K*C_in, N_pad)  im2col activation slab (bf16/f32, lane dim zero-padded)
    w_ref:    (TC, K*C_in)     conv weight tile (rows ordered k*C_in + c)
    gb_ref:   (TC, 2)          column 0 = gamma, column 1 = beta (f32)
    o_ref:    (TC, N_pad)      output tile (lane-dense)
    conv_ref: (TC, N_pad) f32  VMEM staging scratch for the conv result
    """
    # ---- dilated conv for this channel tile: one MXU matmul (f32 accumulation), staged in
    #      VMEM (a (TC, N_pad) f32 tile is far larger than the 64-vreg register file).
    conv_ref[...] = jnp.dot(w_ref[...], a_ref[...], preferred_element_type=jnp.float32)

    # ---- BatchNorm1d (training mode): per-channel sum and sum-of-squares fused into ONE
    #      chunked pass over the staged conv result.  Padded lane columns of `a` are zero and
    #      there is no conv bias, so they contribute exactly 0; divide by the true count.
    tc = conv_ref.shape[0]
    num_chunks = conv_ref.shape[1] // n_chunk
    zero = jnp.zeros((tc, 1), jnp.float32)

    def chunk_body(c, carry):
        s, ss = carry
        start = pl.multiple_of(c * n_chunk, n_chunk)
        blk = conv_ref[:, pl.ds(start, n_chunk)]
        return (s + jnp.sum(blk, axis=1, keepdims=True),
                ss + jnp.sum(blk * blk, axis=1, keepdims=True))

    s, ss = jax.lax.fori_loop(0, num_chunks, chunk_body, (zero, zero),
                              unroll=num_chunks <= 8)

    inv_n = 1.0 / n_valid
    mean = s * inv_n
    var = jnp.maximum(ss * inv_n - mean * mean, 0.0)     # single-pass var can round < 0

    # Fold gamma / rsqrt(var+eps) / beta / mean into one per-channel scale & shift.
    gamma = gb_ref[:, 0:1]
    beta = gb_ref[:, 1:2]
    scale = gamma * jax.lax.rsqrt(var + eps)
    shift = beta - mean * scale

    # ---- normalize + affine + ReLU: one fused elementwise pass, one lane-dense store.
    o_ref[...] = jnp.maximum(conv_ref[...] * scale + shift, 0.0).astype(o_ref.dtype)


def tcn_block(x, weight, bias, gamma, beta, *, kernel_size, dilation, eps=1e-5,
              matmul_dtype=jnp.bfloat16, out_dtype=None):
    """x: (B, C_in, L); weight: (C_out, C_in, K); returns (B, C_out, L + (K-1)*dilation).

    `bias` is accepted for interface parity but unused: with training-mode BatchNorm the
    per-channel conv bias is exactly cancelled by the batch-mean subtraction.
    """
    del bias
    B, C_in, L = x.shape
    C_out, _, K = weight.shape
    assert K == kernel_size
    pad = (K - 1) * dilation
    L_out = L + 2 * pad - dilation * (K - 1)             # = L + (K-1)*dilation (PyTorch conv1d)
    out_dtype = x.dtype if out_dtype is None else out_dtype

    # ---------- wrapper-side layout plumbing (im2col slab, lane-dense padding) ----------
    x_pad = jnp.pad(x.astype(jnp.float32), ((0, 0), (0, 0), (pad, pad)))   # (B, C_in, L_pad)
    x_t = jnp.transpose(x_pad, (1, 0, 2))                                  # (C_in, B, L_pad)
    taps = [x_t[:, :, k * dilation: k * dilation + L_out] for k in range(K)]
    slab = jnp.concatenate(taps, axis=0).reshape(K * C_in, B * L_out)      # row = k*C_in + c
    N = B * L_out
    N_pad = _round_up(N, 128)                                              # lane-dense output
    slab = jnp.pad(slab, ((0, 0), (0, N_pad - N))).astype(matmul_dtype)

    # weight (C_out, C_in, K) -> (C_out, K*C_in), matching the slab's (k, c) row order.
    w2 = jnp.transpose(weight.astype(jnp.float32), (0, 2, 1)).reshape(C_out, K * C_in)

    TC = _pick_channel_tile(C_out)
    C_pad = _round_up(C_out, TC)
    w2 = jnp.pad(w2, ((0, C_pad - C_out), (0, 0))).astype(matmul_dtype)
    # gamma/beta merged into a single (C_pad, 2) operand.
    gb = jnp.stack([gamma.astype(jnp.float32), beta.astype(jnp.float32)], axis=1)
    gb = jnp.pad(gb, ((0, C_pad - C_out), (0, 0)))

    KC = K * C_in
    n_chunk = max(c for c in (1024, 512, 256, 128) if N_pad % c == 0)
    kernel = functools.partial(_tcn_kernel, n_valid=float(N), eps=eps, n_chunk=n_chunk)

    # Explicit VMEM budget: single-buffered slab, double-buffered weight/gb/out tiles, plus the
    # conv staging scratch; 2x headroom, floored at the 32 MiB default scoped limit.
    op_bytes = jnp.dtype(matmul_dtype).itemsize
    vmem_bytes = (KC * N_pad * op_bytes                            # slab (1 buffer)
                  + 2 * TC * KC * op_bytes                         # weight tile
                  + 2 * TC * 2 * 4                                 # gamma/beta tile
                  + 2 * TC * N_pad * jnp.dtype(out_dtype).itemsize # output tile
                  + TC * N_pad * 4)                                # conv staging scratch
    vmem_limit = int(min(100 * 1024 * 1024, max(32 * 1024 * 1024, 2 * vmem_bytes)))

    def build(slab_pipeline_mode):
        slab_kwargs = {} if slab_pipeline_mode is None else dict(pipeline_mode=slab_pipeline_mode)
        return pl.pallas_call(
            kernel,
            out_shape=jax.ShapeDtypeStruct((C_pad, N_pad), out_dtype),
            grid_spec=pltpu.PrefetchScalarGridSpec(
                num_scalar_prefetch=0,
                grid=(C_pad // TC,),
                in_specs=[
                    # im2col slab: shared by every channel tile -> fetched once.
                    pl.BlockSpec((KC, N_pad), lambda i: (0, 0), **slab_kwargs),
                    pl.BlockSpec((TC, KC), lambda i: (i, 0)),     # weight tile
                    pl.BlockSpec((TC, 2), lambda i: (i, 0)),      # gamma|beta tile
                ],
                out_specs=pl.BlockSpec((TC, N_pad), lambda i: (i, 0)),
                scratch_shapes=[pltpu.VMEM((TC, N_pad), jnp.float32)],   # conv staging
            ),
            compiler_params=pltpu.CompilerParams(
                dimension_semantics=("parallel",),
                vmem_limit_bytes=vmem_limit,
            ),
        )

    # The slab's block index is constant across grid steps -> single-buffer it; fall back to
    # default pipelining if this jax build does not accept pipeline_mode on a BlockSpec.
    try:
        out = build(pl.Buffered(1) if hasattr(pl, "Buffered") else None)(slab, w2, gb)
    except Exception:  # pragma: no cover - older jax without pipeline_mode support
        out = build(None)(slab, w2, gb)

    # Undo layout: (C_pad, N_pad) -> (C_out, B, L_out) -> (B, C_out, L_out).
    out = out[:C_out, :N].reshape(C_out, B, L_out)
    return jnp.transpose(out, (1, 0, 2))


def tcn_block_reference(x, weight, bias, gamma, beta, *, kernel_size, dilation, eps=1e-5):
    """Pure-JAX reference matching torch semantics (BatchNorm1d in training mode)."""
    K = kernel_size
    pad = (K - 1) * dilation
    y = jax.lax.conv_general_dilated(
        x, weight, window_strides=(1,), padding=[(pad, pad)],
        rhs_dilation=(dilation,), dimension_numbers=("NCH", "OIH", "NCH"),
    ) + bias[None, :, None]
    mean = jnp.mean(y, axis=(0, 2), keepdims=True)
    var = jnp.mean((y - mean) ** 2, axis=(0, 2), keepdims=True)
    yhat = (y - mean) * jax.lax.rsqrt(var + eps)
    out = yhat * gamma[None, :, None] + beta[None, :, None]
    return jnp.maximum(out, 0.0)


if __name__ == "__main__":
    # Small shapes: batch=2, in_channels=4, out_channels=8, length=16, kernel=3, dilation=2.
    B, C_in, C_out, L = 2, 4, 8, 16
    kernel_size, dilation = 3, 2

    key = jax.random.PRNGKey(0)
    kx, kw, kb = jax.random.split(key, 3)

    x = jax.random.normal(kx, (B, C_in, L), dtype=jnp.float32)
    weight = jax.random.normal(kw, (C_out, C_in, kernel_size), dtype=jnp.float32) * 0.2
    bias = jax.random.normal(kb, (C_out,), dtype=jnp.float32) * 0.1
    gamma = jnp.ones((C_out,), dtype=jnp.float32)     # nn.BatchNorm1d weight init
    beta = jnp.zeros((C_out,), dtype=jnp.float32)     # nn.BatchNorm1d bias init

    ref = jax.block_until_ready(tcn_block_reference(
        x, weight, bias, gamma, beta, kernel_size=kernel_size, dilation=dilation))

    # f32-operand path: exact check against the reference.
    out_f32 = jax.block_until_ready(tcn_block(
        x, weight, bias, gamma, beta, kernel_size=kernel_size, dilation=dilation,
        matmul_dtype=jnp.float32))
    assert out_f32.shape == (B, C_out, L + (kernel_size - 1) * dilation), out_f32.shape
    assert jnp.allclose(out_f32, ref, atol=1e-4, rtol=1e-4), \
        float(jnp.max(jnp.abs(out_f32 - ref)))

    # Default bf16-operand path (native MXU rate); f32 accumulation + f32 BN math.
    out_bf16 = jax.block_until_ready(tcn_block(
        x, weight, bias, gamma, beta, kernel_size=kernel_size, dilation=dilation))
    assert out_bf16.shape == out_f32.shape
    assert jnp.allclose(out_bf16, ref, atol=5e-2, rtol=5e-2), \
        float(jnp.max(jnp.abs(out_bf16 - ref)))

    print("KERNEL_OK")
</pallas_src>

<mosaic_0001>
module attributes {stable_mosaic.version = 11 : i64} {
  func.func @_tcn_kernel(%arg0: i32, %arg1: memref<12x128xf32, #tpu.memory_space<vmem>>, %arg2: memref<8x12xf32, #tpu.memory_space<vmem>>, %arg3: memref<8x2xf32, #tpu.memory_space<vmem>>, %arg4: memref<8x128xf32, #tpu.memory_space<vmem>>, %arg5: memref<8x128xf32, #tpu.memory_space<vmem>>) attributes {dimension_semantics = [#tpu.dimension_semantics<parallel>], iteration_bounds = array<i64: 1>, scalar_prefetch = 0 : i64, scratch_operands = 1 : i64, tpu.core_type = #tpu.core_type<tc>, window_params = [{pipeline_mode = #tpu.pipeline_mode<synchronous>, transform_indices = @transform_0, window_bounds = array<i64: 12, 128>}, {transform_indices = @transform_1, window_bounds = array<i64: 8, 12>}, {transform_indices = @transform_2, window_bounds = array<i64: 8, 2>}, {transform_indices = @transform_3, window_bounds = array<i64: 8, 128>}]} {
    %c0 = arith.constant 0 : index
    %c0_0 = arith.constant 0 : index
    %0 = vector.load %arg2[%c0, %c0_0] : memref<8x12xf32, #tpu.memory_space<vmem>>, vector<8x12xf32>
    %c0_1 = arith.constant 0 : index
    %c0_2 = arith.constant 0 : index
    %1 = vector.load %arg1[%c0_1, %c0_2] : memref<12x128xf32, #tpu.memory_space<vmem>>, vector<12x128xf32>
    %cst = arith.constant dense<0.000000e+00> : vector<8x128xf32>
    %2 = tpu.matmul %0, %1, %cst {dimension_numbers = #tpu.dot_dimension_numbers<[1], [0], [0], [1], [0, 0, 1, 1], [], []>} : vector<8x12xf32>, vector<12x128xf32>, vector<8x128xf32> -> vector<8x128xf32>
    %c0_3 = arith.constant 0 : index
    %c0_4 = arith.constant 0 : index
    %3 = vector.load %arg5[%c0_3, %c0_4] : memref<8x128xf32, #tpu.memory_space<vmem>>, vector<8x128xf32>
    tpu.vector_store %arg5[%c0_3, %c0_4], %2 {strides = array<i32>} : memref<8x128xf32, #tpu.memory_space<vmem>>, vector<8x128xf32>,
    %cst_5 = arith.constant 0.000000e+00 : f32
    %4 = vector.broadcast %cst_5 : f32 to vector<8x1xf32>
    %c0_i32 = arith.constant 0 : i32
    %c128_i32 = arith.constant 128 : i32
    %5 = arith.muli %c0_i32, %c128_i32 : i32
    %6 = tpu.assume_multiple %5, 128 : i32
    %c0_6 = arith.constant 0 : index
    %7 = arith.index_cast %6 : i32 to index
    %8 = vector.load %arg5[%c0_6, %7] : memref<8x128xf32, #tpu.memory_space<vmem>>, vector<8x128xf32>
    %cst_7 = arith.constant dense<0.000000e+00> : vector<8xf32>
    %9 = vector.multi_reduction <add>, %8, %cst_7 [1] : vector<8x128xf32> to vector<8xf32>
    %10 = vector.shape_cast %9 : vector<8xf32> to vector<8x1xf32>
    %11 = arith.addf %4, %10 : vector<8x1xf32>
    %12 = arith.mulf %8, %8 : vector<8x128xf32>
    %cst_8 = arith.constant dense<0.000000e+00> : vector<8xf32>
    %13 = vector.multi_reduction <add>, %12, %cst_8 [1] : vector<8x128xf32> to vector<8xf32>
    %14 = vector.shape_cast %13 : vector<8xf32> to vector<8x1xf32>
    %15 = arith.addf %4, %14 : vector<8x1xf32>
    %c1_i32 = arith.constant 1 : i32
    %cst_9 = arith.constant 2.500000e-02 : f32
    %16 = vector.broadcast %cst_9 : f32 to vector<8x1xf32>
    %17 = arith.mulf %11, %16 : vector<8x1xf32>
    %cst_10 = arith.constant 2.500000e-02 : f32
    %18 = vector.broadcast %cst_10 : f32 to vector<8x1xf32>
    %19 = arith.mulf %15, %18 : vector<8x1xf32>
    %20 = arith.mulf %17, %17 : vector<8x1xf32>
    %21 = arith.subf %19, %20 : vector<8x1xf32>
    %cst_11 = arith.constant 0.000000e+00 : f32
    %22 = vector.broadcast %cst_11 : f32 to vector<8x1xf32>
    %23 = arith.maximumf %21, %22 : vector<8x1xf32>
    %c0_12 = arith.constant 0 : index
    %c0_13 = arith.constant 0 : index
    %24 = vector.load %arg3[%c0_12, %c0_13] : memref<8x2xf32, #tpu.memory_space<vmem>>, vector<8x1xf32>
    %c0_14 = arith.constant 0 : index
    %c1 = arith.constant 1 : index
    %25 = vector.load %arg3[%c0_14, %c1] : memref<8x2xf32, #tpu.memory_space<vmem>>, vector<8x1xf32>
    %cst_15 = arith.constant 9.99999974E-6 : f32
    %26 = vector.broadcast %cst_15 : f32 to vector<8x1xf32>
    %27 = arith.addf %23, %26 : vector<8x1xf32>
    %28 = math.rsqrt %27 : vector<8x1xf32>
    %29 = arith.mulf %24, %28 : vector<8x1xf32>
    %30 = arith.mulf %17, %29 : vector<8x1xf32>
    %31 = arith.subf %25, %30 : vector<8x1xf32>
    %c0_16 = arith.constant 0 : index
    %c0_17 = arith.constant 0 : index
    %32 = vector.load %arg5[%c0_16, %c0_17] : memref<8x128xf32, #tpu.memory_space<vmem>>, vector<8x128xf32>
    %33 = vector.broadcast %29 : vector<8x1xf32> to vector<8x128xf32>
    %34 = arith.mulf %32, %33 : vector<8x128xf32>
    %35 = vector.broadcast %31 : vector<8x1xf32> to vector<8x128xf32>
    %36 = arith.addf %34, %35 : vector<8x128xf32>
    %cst_18 = arith.constant 0.000000e+00 : f32
    %37 = vector.broadcast %cst_18 : f32 to vector<8x128xf32>
    %38 = arith.maximumf %36, %37 : vector<8x128xf32>
    %c0_19 = arith.constant 0 : index
    %c0_20 = arith.constant 0 : index
    %39 = vector.load %arg4[%c0_19, %c0_20] : memref<8x128xf32, #tpu.memory_space<vmem>>, vector<8x128xf32>
    tpu.vector_store %arg4[%c0_19, %c0_20], %38 {strides = array<i32>} : memref<8x128xf32, #tpu.memory_space<vmem>>, vector<8x128xf32>,
    return
  }
  func.func @transform_0(%arg0: i32) -> (i32, i32) {
    %c0_i32 = arith.constant 0 : i32
    %c0_i32_0 = arith.constant 0 : i32
    %c0_i32_1 = arith.constant 0 : i32
    return %c0_i32, %c0_i32_0 : i32, i32
  }
  func.func @transform_1(%arg0: i32) -> (i32, i32) {
    %c0_i32 = arith.constant 0 : i32
    %c0_i32_0 = arith.constant 0 : i32
    return %arg0, %c0_i32 : i32, i32
  }
  func.func @transform_2(%arg0: i32) -> (i32, i32) {
    %c0_i32 = arith.constant 0 : i32
    %c0_i32_0 = arith.constant 0 : i32
    return %arg0, %c0_i32 : i32, i32
  }
  func.func @transform_3(%arg0: i32) -> (i32, i32) {
    %c0_i32 = arith.constant 0 : i32
    %c0_i32_0 = arith.constant 0 : i32
    return %arg0, %c0_i32 : i32, i32
  }
}

module attributes {stable_mosaic.version = 11 : i64} {
  func.func @_tcn_kernel(%arg0: i32, %arg1: memref<12x128xf32, #tpu.memory_space<vmem>>, %arg2: memref<8x12xf32, #tpu.memory_space<vmem>>, %arg3: memref<8x2xf32, #tpu.memory_space<vmem>>, %arg4: memref<8x128xf32, #tpu.memory_space<vmem>>, %arg5: memref<8x128xf32, #tpu.memory_space<vmem>>) attributes {dimension_semantics = [#tpu.dimension_semantics<parallel>], iteration_bounds = array<i64: 1>, scalar_prefetch = 0 : i64, scratch_operands = 1 : i64, tpu.core_type = #tpu.core_type<tc>, window_params = [{pipeline_mode = #tpu.pipeline_mode<synchronous>, transform_indices = @transform_0, window_bounds = array<i64: 12, 128>}, {transform_indices = @transform_1, window_bounds = array<i64: 8, 12>}, {transform_indices = @transform_2, window_bounds = array<i64: 8, 2>}, {transform_indices = @transform_3, window_bounds = array<i64: 8, 128>}]} {
    %c0 = arith.constant 0 : index
    %c0_0 = arith.constant 0 : index
    %0 = vector.load %arg2[%c0, %c0_0] : memref<8x12xf32, #tpu.memory_space<vmem>>, vector<8x12xf32>
    %c0_1 = arith.constant 0 : index
    %c0_2 = arith.constant 0 : index
    %1 = vector.load %arg1[%c0_1, %c0_2] : memref<12x128xf32, #tpu.memory_space<vmem>>, vector<12x128xf32>
    %cst = arith.constant dense<0.000000e+00> : vector<8x128xf32>
    %2 = tpu.matmul %0, %1, %cst {dimension_numbers = #tpu.dot_dimension_numbers<[1], [0], [0], [1], [0, 0, 1, 1], [], []>} : vector<8x12xf32>, vector<12x128xf32>, vector<8x128xf32> -> vector<8x128xf32>
    %c0_3 = arith.constant 0 : index
    %c0_4 = arith.constant 0 : index
    %3 = vector.load %arg5[%c0_3, %c0_4] : memref<8x128xf32, #tpu.memory_space<vmem>>, vector<8x128xf32>
    tpu.vector_store %arg5[%c0_3, %c0_4], %2 {strides = array<i32>} : memref<8x128xf32, #tpu.memory_space<vmem>>, vector<8x128xf32>,
    %cst_5 = arith.constant 0.000000e+00 : f32
    %4 = vector.broadcast %cst_5 : f32 to vector<8x1xf32>
    %c0_i32 = arith.constant 0 : i32
    %c128_i32 = arith.constant 128 : i32
    %5 = arith.muli %c0_i32, %c128_i32 : i32
    %6 = tpu.assume_multiple %5, 128 : i32
    %c0_6 = arith.constant 0 : index
    %7 = arith.index_cast %6 : i32 to index
    %8 = vector.load %arg5[%c0_6, %7] : memref<8x128xf32, #tpu.memory_space<vmem>>, vector<8x128xf32>
    %cst_7 = arith.constant dense<0.000000e+00> : vector<8xf32>
    %9 = vector.multi_reduction <add>, %8, %cst_7 [1] : vector<8x128xf32> to vector<8xf32>
    %10 = vector.shape_cast %9 : vector<8xf32> to vector<8x1xf32>
    %11 = arith.addf %4, %10 : vector<8x1xf32>
    %12 = arith.mulf %8, %8 : vector<8x128xf32>
    %cst_8 = arith.constant dense<0.000000e+00> : vector<8xf32>
    %13 = vector.multi_reduction <add>, %12, %cst_8 [1] : vector<8x128xf32> to vector<8xf32>
    %14 = vector.shape_cast %13 : vector<8xf32> to vector<8x1xf32>
    %15 = arith.addf %4, %14 : vector<8x1xf32>
    %c1_i32 = arith.constant 1 : i32
    %cst_9 = arith.constant 2.500000e-02 : f32
    %16 = vector.broadcast %cst_9 : f32 to vector<8x1xf32>
    %17 = arith.mulf %11, %16 : vector<8x1xf32>
    %cst_10 = arith.constant 2.500000e-02 : f32
    %18 = vector.broadcast %cst_10 : f32 to vector<8x1xf32>
    %19 = arith.mulf %15, %18 : vector<8x1xf32>
    %20 = arith.mulf %17, %17 : vector<8x1xf32>
    %21 = arith.subf %19, %20 : vector<8x1xf32>
    %cst_11 = arith.constant 0.000000e+00 : f32
    %22 = vector.broadcast %cst_11 : f32 to vector<8x1xf32>
    %23 = arith.maximumf %21, %22 : vector<8x1xf32>
    %c0_12 = arith.constant 0 : index
    %c0_13 = arith.constant 0 : index
    %24 = vector.load %arg3[%c0_12, %c0_13] : memref<8x2xf32, #tpu.memory_space<vmem>>, vector<8x1xf32>
    %c0_14 = arith.constant 0 : index
    %c1 = arith.constant 1 : index
    %25 = vector.load %arg3[%c0_14, %c1] : memref<8x2xf32, #tpu.memory_space<vmem>>, vector<8x1xf32>
    %cst_15 = arith.constant 9.99999974E-6 : f32
    %26 = vector.broadcast %cst_15 : f32 to vector<8x1xf32>
    %27 = arith.addf %23, %26 : vector<8x1xf32>
    %28 = math.rsqrt %27 : vector<8x1xf32>
    %29 = arith.mulf %24, %28 : vector<8x1xf32>
    %30 = arith.mulf %17, %29 : vector<8x1xf32>
    %31 = arith.subf %25, %30 : vector<8x1xf32>
    %c0_16 = arith.constant 0 : index
    %c0_17 = arith.constant 0 : index
    %32 = vector.load %arg5[%c0_16, %c0_17] : memref<8x128xf32, #tpu.memory_space<vmem>>, vector<8x128xf32>
    %33 = vector.broadcast %29 : vector<8x1xf32> to vector<8x128xf32>
    %34 = arith.mulf %32, %33 : vector<8x128xf32>
    %35 = vector.broadcast %31 : vector<8x1xf32> to vector<8x128xf32>
    %36 = arith.addf %34, %35 : vector<8x128xf32>
    %cst_18 = arith.constant 0.000000e+00 : f32
    %37 = vector.broadcast %cst_18 : f32 to vector<8x128xf32>
    %38 = arith.maximumf %36, %37 : vector<8x128xf32>
    %c0_19 = arith.constant 0 : index
    %c0_20 = arith.constant 0 : index
    %39 = vector.load %arg4[%c0_19, %c0_20] : memref<8x128xf32, #tpu.memory_space<vmem>>, vector<8x128xf32>
    tpu.vector_store %arg4[%c0_19, %c0_20], %38 {strides = array<i32>} : memref<8x128xf32, #tpu.memory_space<vmem>>, vector<8x128xf32>,
    return
  }
  func.func @transform_0(%arg0: i32) -> (i32, i32) {
    %c0_i32 = arith.constant 0 : i32
    %c0_i32_0 = arith.constant 0 : i32
    %c0_i32_1 = arith.constant 0 : i32
    return %c0_i32, %c0_i32_0 : i32, i32
  }
  func.func @transform_1(%arg0: i32) -> (i32, i32) {
    %c0_i32 = arith.constant 0 : i32
    %c0_i32_0 = arith.constant 0 : i32
    return %arg0, %c0_i32 : i32, i32
  }
  func.func @transform_2(%arg0: i32) -> (i32, i32) {
    %c0_i32 = arith.constant 0 : i32
    %c0_i32_0 = arith.constant 0 : i32
    return %arg0, %c0_i32 : i32, i32
  }
  func.func @transform_3(%arg0: i32) -> (i32, i32) {
    %c0_i32 = arith.constant 0 : i32
    %c0_i32_0 = arith.constant 0 : i32
    return %arg0, %c0_i32 : i32, i32
  }
}

</mosaic_0001>

<bundles_post_ra>
// kernel: tpu_custom_call.1
= control target key start
LH: loop header
LB: loop body
LE: loop exit
PB: predicated region body
PF: predicated region fallthrough
CT: control target
= control target key end

     0   :  { %8 = vsyncpa [#allocation4], 0  ;;  %s304_s0 = inlined_call_operand.hbm [shape: f32[12,128], index: 0, kind: input, shape index: {}]   ;;  %s305_s1 = inlined_call_operand.vmem [shape: f32[8,12], index: 1, kind: input, shape index: {}]   ;;  %s306_s2 = inlined_call_operand.vmem [shape: f32[8,2], index: 2, kind: input, shape index: {}]   ;;  %s307_s3 = inlined_call_operand.hbm [shape: f32[8,128], index: 3, kind: output, shape index: {}]  }
   0x1   :  { %9 = vsyncpa [#allocation5], 0  ;;  %s243_s12 = smov [#allocation3]   ;;  %s195_s16 = scalar_lea.hbm %s304_s0, 256 }
   0x2   :  { %s15_s13 = sshll.u32 %s243_s12, 4  ;;  %p196_p0 = scmp.ne.s32.totalorder %s304_s0, %s195_s16  ;;  %s16_s13 = int_to_ptr.vmem [resolvable:$true] %s15_s13 }
   0x3   :  { %p199_p1 = scmp.lt.u32.totalorder %s195_s16, %s304_s0 }
   0x5   :  { %p201_p2 = pnand %p199_p1, %p196_p0 }
   0x7   :  { %204 = shalt.err (!%p201_p2)
}
   0x8   :  { %s205_s21 = scalar_lea.vmem %s16_s13, 256  ;;  %p210_p4 = scmp.lt.s32.totalorder %s16_s13, %s16_s13 }
   0x9   :  { %p206_p3 = scmp.ne.s32.totalorder %s16_s13, %s205_s21  ;;  %p211_p5 = scmp.lt.s32.totalorder %s205_s21, %s205_s21 }
   0xb   :  { %p212_p6 = por %p211_p5, %p210_p4 }
   0xd   :  { %p213_p7 = pnand %p212_p6, %p206_p3 }
   0xf   :  { %216 = shalt.err (!%p213_p7)
}
  0x10   :  { %s244_s22 = smov 128   ;;  %s245_s23 = smov 8  }
  0x11   :  { %21 = dma.hbm_to_vmem [thread:$0]  %s304_s0, 256, %s16_s13, [#allocation4], %s244_s22, %s244_s22, %s245_s23  }
  0x12   :  { %239 = dma.done.wait [#allocation4], 256  }
  0x13   :  { %240 = vsyncadd [#allocation4], 4294967040  ;;  %v246_v0 = vmov 0.0|0.0   ;;  %vm247_vm0 = vmmov 0   ;;  %v248_v1 = vmov 0.0   ;;  %vm36_vm1 = vcmask 1043456  }
  0x14   :  { %176 = vmatprep.subr.bf16.mxu0 %v246_v0  ;;  %173 = vmatprep.mubr.msk.f32.mxu0 %vm247_vm0, %v248_v1  ;;  %v30_v2 = vld [vmem:[#allocation3] sm:$0xff]  ;;  %v31_v3 = vld [vmem:[#allocation3 + $0x8] sm:$0xf]  ;;  %vm249_vm2 = vmmov 1   ;;  %vm32_vm4 = vcmask 97280   ;;  %v250_v9 = vmov 0  }
  0x15   :  { %vm178_vm3 = vmpackc.low %vm36_vm1, %vm249_vm2  ;;  %v177_v4 = vpack.c.bf16 %v31_v3, %v30_v2  ;;  %v29_v5 = vld [vmem:[%s305_s1] sm:$0xff]  ;;  %191 = vset.pattern.permute.xlu1 %v250_v9  ;;  %v251_v18 = vmov 1   ;;  %s252_s28 = smov 1   ;;  %s253_s29 = smov [#allocation6]  }
  0x16   :  { %192 = vset.pattern.permute.xlu0 %v251_v18  ;;  %v124_v19 = vld [vmem:[%s306_s2] sm:$0xff]  ;;  %s155_s30 = sshll.u32 %s253_s29, 4  ;;  %s156_s30 = int_to_ptr.vmem [resolvable:$true] %s155_s30 }
  0x17   :  { %179 = vmatpush3.bf16.msk.msra.mxu0 %vm178_vm3, %v177_v4  ;;  %s217_s4 = scalar_lea.vmem %s156_s30, 128  ;;  %p222_p9 = scmp.lt.s32.totalorder %s156_s30, %s156_s30 }
  0x18   :  { %p218_p8 = scmp.ne.s32.totalorder %s156_s30, %s217_s4  ;;  %p223_p10 = scmp.lt.s32.totalorder %s217_s4, %s217_s4 }
  0x1a   :  { %174 = vmatmul.mubr.msk.f32.vlgmr.msra.gmra.mrb[0].mxu0 %vm32_vm4, %v29_v5  ;;  %p224_p11 = por %p223_p10, %p222_p9 }
  0x1c   :  { %p225_p12 = pnand %p224_p11, %p218_p8 }
  0xed   :  { %v106_v6 = vpop.f32.mrb[0].mxu0 }
  0xee   :  { %112 = vadd.xlane.f32.xlu0 %v106_v6  ;;  %v175_v7 = vpop.f32.mrb[1].mxu0  ;;  %v115_v8 = vmul.f32 %v106_v6, %v106_v6 }
  0xf2   :  { %116 = vadd.xlane.f32.xlu0 %v115_v8 }
 0x17b   :  { %v113_v10 = vpop.xlane.xlu0 %112 }
 0x17c   :  { %v119_v11 = vmul.f32 0.025, %v113_v10 }
 0x17e   :  { %v121_v13 = vmul.f32 %v119_v11, %v119_v11 }
 0x17f   :  { %v117_v12 = vpop.xlane.xlu0 %116 }
 0x180   :  { %v120_v14 = vmul.f32 0.025, %v117_v12 }
 0x182   :  { %v122_v15 = vsub.f32 %v120_v14, %v121_v13 }
 0x184   :  { %v123_v16 = vmax.f32 %v122_v15, 0.0 }
 0x186   :  { %v125_v17 = vadd.f32 1e-05, %v123_v16 }
 0x188   :  { %193 = vrsqrt.f32 %v125_v17 }
 0x192   :  { %v194_v20 = vpop.eup %193 }
 0x193   :  { %v127_v21 = vmul.f32 %v194_v20, %v124_v19 }
 0x195   :  { %v128_v22 = vmul.f32 %v127_v21, %v119_v11 }
 0x197   :  { %130 = vrot.lane.b32.xlu1 %v128_v22, %s252_s28 }
 0x19b   :  { %137 = vperm.xlu1 %191, %v127_v21  }
 0x209   :  { %v131_v23 = vpop.permute.xlu1 %130 }
 0x20a   :  { %v133_v24 = vsub.f32 %v124_v19, %v131_v23 }
 0x20c   :  { %143 = vperm.xlu0 %192, %v133_v24  }
 0x21a   :  { %v138_v25 = vpop.permute.xlu1 %137 }
 0x21b   :  { %v140_v26 = vmul.f32 %v138_v25, %v106_v6 }
 0x28b   :  { %v144_v27 = vpop.permute.xlu0 %143 }
 0x28c   :  { %v146_v28 = vadd.f32 %v144_v27, %v140_v26 }
 0x28e   :  { %v147_v29 = vmax.f32 %v146_v28, 0.0 }
 0x290   :  { %148 = vst [vmem:[#allocation6] sm:$0xff] %v147_v29 }
 0x291   :  { %228 = shalt.err (!%p225_p12)
}
 0x292   :  { %s229_s6 = scalar_lea.hbm %s307_s3, 128 }
 0x293   :  { %p230_p13 = scmp.ne.s32.totalorder %s307_s3, %s229_s6  ;;  %p233_p0 = scmp.lt.u32.totalorder %s229_s6, %s307_s3 }
 0x295   :  { %p235_p1 = pnand %p233_p0, %p230_p13 }
 0x297   :  { %238 = shalt.err (!%p235_p1)
}
 0x298   :  { %158 = dma.vmem_to_hbm [thread:$0]  %s156_s30, 128, %s307_s3, [#allocation5]  }
 0x299   :  { %241 = dma.done.wait [#allocation5], 128  }
 0x29a   :  { %242 = vsyncadd [#allocation5], 4294967168 }
 0x29b   :  { %162 = vsyncpa [#allocation4], 1 }
 0x29c   :  { %163 = vsyncpa [#allocation5], 1 }

// kernel: tpu_custom_call.1
= control target key start
LH: loop header
LB: loop body
LE: loop exit
PB: predicated region body
PF: predicated region fallthrough
CT: control target
= control target key end

     0   :  { %8 = vsyncpa [#allocation4], 0  ;;  %s304_s0 = inlined_call_operand.hbm [shape: f32[12,128], index: 0, kind: input, shape index: {}]   ;;  %s305_s1 = inlined_call_operand.vmem [shape: f32[8,12], index: 1, kind: input, shape index: {}]   ;;  %s306_s2 = inlined_call_operand.vmem [shape: f32[8,2], index: 2, kind: input, shape index: {}]   ;;  %s307_s3 = inlined_call_operand.hbm [shape: f32[8,128], index: 3, kind: output, shape index: {}]  }
   0x1   :  { %9 = vsyncpa [#allocation5], 0  ;;  %s243_s12 = smov [#allocation3]   ;;  %s195_s16 = scalar_lea.hbm %s304_s0, 256 }
   0x2   :  { %s15_s13 = sshll.u32 %s243_s12, 4  ;;  %p196_p0 = scmp.ne.s32.totalorder %s304_s0, %s195_s16  ;;  %s16_s13 = int_to_ptr.vmem [resolvable:$true] %s15_s13 }
   0x3   :  { %p199_p1 = scmp.lt.u32.totalorder %s195_s16, %s304_s0 }
   0x5   :  { %p201_p2 = pnand %p199_p1, %p196_p0 }
   0x7   :  { %204 = shalt.err (!%p201_p2)
}
   0x8   :  { %s205_s21 = scalar_lea.vmem %s16_s13, 256  ;;  %p210_p4 = scmp.lt.s32.totalorder %s16_s13, %s16_s13 }
   0x9   :  { %p206_p3 = scmp.ne.s32.totalorder %s16_s13, %s205_s21  ;;  %p211_p5 = scmp.lt.s32.totalorder %s205_s21, %s205_s21 }
   0xb   :  { %p212_p6 = por %p211_p5, %p210_p4 }
   0xd   :  { %p213_p7 = pnand %p212_p6, %p206_p3 }
   0xf   :  { %216 = shalt.err (!%p213_p7)
}
  0x10   :  { %s244_s22 = smov 128   ;;  %s245_s23 = smov 8  }
  0x11   :  { %21 = dma.hbm_to_vmem [thread:$0]  %s304_s0, 256, %s16_s13, [#allocation4], %s244_s22, %s244_s22, %s245_s23  }
  0x12   :  { %239 = dma.done.wait [#allocation4], 256  }
  0x13   :  { %240 = vsyncadd [#allocation4], 4294967040  ;;  %v246_v0 = vmov 0.0|0.0   ;;  %vm247_vm0 = vmmov 0   ;;  %v248_v1 = vmov 0.0   ;;  %vm36_vm1 = vcmask 1043456  }
  0x14   :  { %176 = vmatprep.subr.bf16.mxu0 %v246_v0  ;;  %173 = vmatprep.mubr.msk.f32.mxu0 %vm247_vm0, %v248_v1  ;;  %v30_v2 = vld [vmem:[#allocation3] sm:$0xff]  ;;  %v31_v3 = vld [vmem:[#allocation3 + $0x8] sm:$0xf]  ;;  %vm249_vm2 = vmmov 1   ;;  %vm32_vm4 = vcmask 97280   ;;  %v250_v9 = vmov 0  }
  0x15   :  { %vm178_vm3 = vmpackc.low %vm36_vm1, %vm249_vm2  ;;  %v177_v4 = vpack.c.bf16 %v31_v3, %v30_v2  ;;  %v29_v5 = vld [vmem:[%s305_s1] sm:$0xff]  ;;  %191 = vset.pattern.permute.xlu1 %v250_v9  ;;  %v251_v18 = vmov 1   ;;  %s252_s28 = smov 1   ;;  %s253_s29 = smov [#allocation6]  }
  0x16   :  { %192 = vset.pattern.permute.xlu0 %v251_v18  ;;  %v124_v19 = vld [vmem:[%s306_s2] sm:$0xff]  ;;  %s155_s30 = sshll.u32 %s253_s29, 4  ;;  %s156_s30 = int_to_ptr.vmem [resolvable:$true] %s155_s30 }
  0x17   :  { %179 = vmatpush3.bf16.msk.msra.mxu0 %vm178_vm3, %v177_v4  ;;  %s217_s4 = scalar_lea.vmem %s156_s30, 128  ;;  %p222_p9 = scmp.lt.s32.totalorder %s156_s30, %s156_s30 }
  0x18   :  { %p218_p8 = scmp.ne.s32.totalorder %s156_s30, %s217_s4  ;;  %p223_p10 = scmp.lt.s32.totalorder %s217_s4, %s217_s4 }
  0x1a   :  { %174 = vmatmul.mubr.msk.f32.vlgmr.msra.gmra.mrb[0].mxu0 %vm32_vm4, %v29_v5  ;;  %p224_p11 = por %p223_p10, %p222_p9 }
  0x1c   :  { %p225_p12 = pnand %p224_p11, %p218_p8 }
  0xed   :  { %v106_v6 = vpop.f32.mrb[0].mxu0 }
  0xee   :  { %112 = vadd.xlane.f32.xlu0 %v106_v6  ;;  %v175_v7 = vpop.f32.mrb[1].mxu0  ;;  %v115_v8 = vmul.f32 %v106_v6, %v106_v6 }
  0xf2   :  { %116 = vadd.xlane.f32.xlu0 %v115_v8 }
 0x17b   :  { %v113_v10 = vpop.xlane.xlu0 %112 }
 0x17c   :  { %v119_v11 = vmul.f32 0.025, %v113_v10 }
 0x17e   :  { %v121_v13 = vmul.f32 %v119_v11, %v119_v11 }
 0x17f   :  { %v117_v12 = vpop.xlane.xlu0 %116 }
 0x180   :  { %v120_v14 = vmul.f32 0.025, %v117_v12 }
 0x182   :  { %v122_v15 = vsub.f32 %v120_v14, %v121_v13 }
 0x184   :  { %v123_v16 = vmax.f32 %v122_v15, 0.0 }
 0x186   :  { %v125_v17 = vadd.f32 1e-05, %v123_v16 }
 0x188   :  { %193 = vrsqrt.f32 %v125_v17 }
 0x192   :  { %v194_v20 = vpop.eup %193 }
 0x193   :  { %v127_v21 = vmul.f32 %v194_v20, %v124_v19 }
 0x195   :  { %v128_v22 = vmul.f32 %v127_v21, %v119_v11 }
 0x197   :  { %130 = vrot.lane.b32.xlu1 %v128_v22, %s252_s28 }
 0x19b   :  { %137 = vperm.xlu1 %191, %v127_v21  }
 0x209   :  { %v131_v23 = vpop.permute.xlu1 %130 }
 0x20a   :  { %v133_v24 = vsub.f32 %v124_v19, %v131_v23 }
 0x20c   :  { %143 = vperm.xlu0 %192, %v133_v24  }
 0x21a   :  { %v138_v25 = vpop.permute.xlu1 %137 }
 0x21b   :  { %v140_v26 = vmul.f32 %v138_v25, %v106_v6 }
 0x28b   :  { %v144_v27 = vpop.permute.xlu0 %143 }
 0x28c   :  { %v146_v28 = vadd.f32 %v144_v27, %v140_v26 }
 0x28e   :  { %v147_v29 = vmax.f32 %v146_v28, 0.0 }
 0x290   :  { %148 = vst [vmem:[#allocation6] sm:$0xff] %v147_v29 }
 0x291   :  { %228 = shalt.err (!%p225_p12)
}
 0x292   :  { %s229_s6 = scalar_lea.hbm %s307_s3, 128 }
 0x293   :  { %p230_p13 = scmp.ne.s32.totalorder %s307_s3, %s229_s6  ;;  %p233_p0 = scmp.lt.u32.totalorder %s229_s6, %s307_s3 }
 0x295   :  { %p235_p1 = pnand %p233_p0, %p230_p13 }
 0x297   :  { %238 = shalt.err (!%p235_p1)
}
 0x298   :  { %158 = dma.vmem_to_hbm [thread:$0]  %s156_s30, 128, %s307_s3, [#allocation5]  }
 0x299   :  { %241 = dma.done.wait [#allocation5], 128  }
 0x29a   :  { %242 = vsyncadd [#allocation5], 4294967168 }
 0x29b   :  { %162 = vsyncpa [#allocation4], 1 }
 0x29c   :  { %163 = vsyncpa [#allocation5], 1 }

</bundles_post_ra>
